<compile_context>
chip_gen: v5e
topology: v5e:2x2
jax: 0.10.0
libtpu: 0.0.40
codegen_flags: <defaults>
</compile_context>

<pallas_src>
import jax
import jax.numpy as jnp
from jax.experimental import pallas as pl
from jax.experimental.pallas import tpu as pltpu


def _round_up(n, m):
    return ((n + m - 1) // m) * m


def _critic_kernel(xu_ref, w1_ref, b1_ref, w2_ref, b2_ref, w3_ref, b3_ref, o_ref):
    cdt = w1_ref.dtype  # MXU operand dtype (f32 or bf16); accumulation is f32

    # Layer 1: (TB, S+A) @ (S+A, H1P) + b1, ReLU.  Single merged matmul.
    h1 = jnp.dot(xu_ref[...].astype(cdt), w1_ref[...],
                 preferred_element_type=jnp.float32)
    h1 = jnp.maximum(h1 + b1_ref[...], 0.0)

    # Layer 2: (TB, H1P) @ (H1P, H2P) + b2, ReLU.
    h2 = jnp.dot(h1.astype(cdt), w2_ref[...],
                 preferred_element_type=jnp.float32)
    h2 = jnp.maximum(h2 + b2_ref[...], 0.0)

    # Layer 3: N=1 output -> VPU multiply + lane reduction instead of MXU.
    # w3 is stored transposed as (1, H2P) f32; padded columns are zero.
    q = jnp.sum(h2 * w3_ref[...], axis=-1, keepdims=True)      # (TB, 1)
    q = q + b3_ref[0, 0]

    # Lane-dense store: (TB, 1) -> (1, TB) -> (1, 1, TB) block.
    tb = q.shape[0]
    o_ref[...] = jnp.transpose(q).reshape(1, 1, tb).astype(o_ref.dtype)


def critic_forward(x, u, params, *, block_b=1024):
    """x: (B, state_dim), u: (B, action_dim), params from prepare_params -> (B, 1)."""
    w1, b1, w2, b2, w3, b3 = params
    B = x.shape[0]
    D = w1.shape[0]          # state_dim + action_dim
    H1P = w1.shape[1]
    H2P = w2.shape[1]

    # Batch tile: as large as block_b, but at least 2 grid steps for mid-size
    # batches so dimension_semantics=("parallel",) can use both v7x TCs.
    TB = min(block_b, _round_up(max(pl.cdiv(B, 2), 8), 8))
    Bp = _round_up(B, TB)
    nblk = Bp // TB

    # Fused concat + pad batch up to a tile multiple (trivial XLA copies).
    xu = jnp.concatenate([x, u], axis=1)
    if Bp != B:
        xu = jnp.pad(xu, ((0, Bp - B), (0, 0)))

    # Advisory cost estimate so XLA schedules/overlaps this small call well.
    flops = 2 * Bp * (D * H1P + H1P * H2P + H2P)
    bytes_accessed = sum(int(a.size) * a.dtype.itemsize
                         for a in (xu, w1, b1, w2, b2, w3, b3)) + Bp * 4

    def _const_spec(shape):
        zero = (0,) * len(shape)
        return pl.BlockSpec(shape, lambda i: zero)

    out = pl.pallas_call(
        _critic_kernel,
        out_shape=jax.ShapeDtypeStruct((nblk, 1, TB), jnp.float32),
        grid=(nblk,),
        in_specs=[
            pl.BlockSpec((TB, D), lambda i: (i, 0)),            # [x, u] tile
            _const_spec((D, H1P)),                              # W1 (resident)
            _const_spec((1, H1P)),                              # b1
            _const_spec((H1P, H2P)),                            # W2 (resident)
            _const_spec((1, H2P)),                              # b2
            _const_spec((1, H2P)),                              # w3 (row, f32)
            pl.BlockSpec(memory_space=pltpu.MemorySpace.SMEM),  # b3 scalar
        ],
        out_specs=pl.BlockSpec((1, 1, TB), lambda i: (i, 0, 0)),
        compiler_params=pltpu.CompilerParams(
            dimension_semantics=("parallel",),   # megacore / v7x dual-TC split
            vmem_limit_bytes=32 << 20,           # sized for TB=1024 f32 tiles
        ),
        cost_estimate=pl.CostEstimate(
            flops=flops, transcendentals=0, bytes_accessed=bytes_accessed),
        # NOTE: weight inputs keep a constant block index, so they are DMA'd
        # only once; the default double-buffer (~1.5 MiB f32 / 0.8 MiB bf16)
        # is well within the VMEM budget, so no pipeline_mode override needed.
    )(xu, w1, b1, w2, b2, w3, b3)

    return out.reshape(Bp, 1)[:B]


def init_critic_params(key, state_dim, action_dim, h1=400, h2=300):
    """Raw params mimicking PyTorch nn.Linear default init (uniform +/- 1/sqrt(fan_in)),
    stored as (in_features, out_features), i.e. transposed vs. PyTorch."""
    dims = [(state_dim + action_dim, h1), (h1, h2), (h2, 1)]
    params = []
    for fan_in, fan_out in dims:
        key, kw, kb = jax.random.split(key, 3)
        bound = 1.0 / (fan_in ** 0.5)
        w = jax.random.uniform(kw, (fan_in, fan_out), jnp.float32, -bound, bound)
        b = jax.random.uniform(kb, (fan_out,), jnp.float32, -bound, bound)
        params += [w, b]
    return tuple(params)


def prepare_params(raw, weights_dtype=jnp.bfloat16):
    """Zero-pad hidden dims to lane multiples (400->512, 300->384), transpose
    w3 to a (1, H2P) row, and cast MXU weights (bf16 by default)."""
    w1, b1, w2, b2, w3, b3 = raw
    h1 = w1.shape[1]
    h2 = w2.shape[1]
    h1p = _round_up(h1, 128)   # 400 -> 512
    h2p = _round_up(h2, 128)   # 300 -> 384

    w1p = jnp.pad(w1, ((0, 0), (0, h1p - h1)))
    b1p = jnp.pad(b1.reshape(1, h1), ((0, 0), (0, h1p - h1)))
    w2p = jnp.pad(w2, ((0, h1p - h1), (0, h2p - h2)))
    b2p = jnp.pad(b2.reshape(1, h2), ((0, 0), (0, h2p - h2)))
    w3p = jnp.pad(w3.reshape(1, h2), ((0, 0), (0, h2p - h2)))
    b3p = b3.reshape(1, 1)

    return (
        w1p.astype(weights_dtype),
        b1p.astype(jnp.float32),
        w2p.astype(weights_dtype),
        b2p.astype(jnp.float32),
        w3p.astype(jnp.float32),   # layer 3 stays f32 (VPU elementwise path)
        b3p.astype(jnp.float32),
    )


if __name__ == "__main__":
    state_dim, action_dim = 8, 4

    key = jax.random.PRNGKey(0)
    kp, kx, ku = jax.random.split(key, 3)
    raw = init_critic_params(kp, state_dim, action_dim)

    def reference(x, u):
        w1, b1, w2, b2, w3, b3 = raw
        xu = jnp.concatenate([x, u], axis=1)
        h = jnp.maximum(jnp.dot(xu, w1, precision="highest") + b1, 0.0)
        h = jnp.maximum(jnp.dot(h, w2, precision="highest") + b2, 0.0)
        return jnp.dot(h, w3, precision="highest") + b3

    params_f32 = prepare_params(raw, weights_dtype=jnp.float32)
    params_bf16 = prepare_params(raw)   # production default: bf16 MXU operands

    # Second case uses a batch that is NOT a multiple of the tile to exercise
    # the padded / lane-dense store path.
    for batch in (2, 10):
        kxb = jax.random.fold_in(kx, batch)
        kub = jax.random.fold_in(ku, batch)
        x = jax.random.normal(kxb, (batch, state_dim), jnp.float32)
        u = jax.random.normal(kub, (batch, action_dim), jnp.float32)
        ref = reference(x, u)

        q32 = critic_forward(x, u, params_f32)
        jax.block_until_ready(q32)
        assert q32.shape == (batch, 1)
        assert jnp.allclose(q32, ref, atol=1e-3, rtol=1e-3), \
            f"f32 mismatch at batch={batch}"

        qbf = critic_forward(x, u, params_bf16)
        jax.block_until_ready(qbf)
        assert qbf.shape == (batch, 1)
        assert jnp.allclose(qbf, ref, atol=5e-2, rtol=5e-2), \
            f"bf16 mismatch at batch={batch}"

    print("KERNEL_OK")
</pallas_src>

<mosaic_0001>
module attributes {stable_mosaic.version = 11 : i64} {
  func.func @_critic_kernel(%arg0: i32, %arg1: memref<8x12xf32, #tpu.memory_space<vmem>>, %arg2: memref<12x512xf32, #tpu.memory_space<vmem>>, %arg3: memref<1x512xf32, #tpu.memory_space<vmem>>, %arg4: memref<512x384xf32, #tpu.memory_space<vmem>>, %arg5: memref<1x384xf32, #tpu.memory_space<vmem>>, %arg6: memref<1x384xf32, #tpu.memory_space<vmem>>, %arg7: memref<1x1xf32, #tpu.memory_space<smem>>, %arg8: memref<1x1x8xf32, #tpu.memory_space<vmem>>) attributes {dimension_semantics = [#tpu.dimension_semantics<parallel>], iteration_bounds = array<i64: 1>, scalar_prefetch = 0 : i64, scratch_operands = 0 : i64, tpu.core_type = #tpu.core_type<tc>, window_params = [{transform_indices = @transform_0, window_bounds = array<i64: 8, 12>}, {pipeline_mode = #tpu.pipeline_mode<synchronous>, transform_indices = @transform_1, window_bounds = array<i64: 12, 512>}, {pipeline_mode = #tpu.pipeline_mode<synchronous>, transform_indices = @transform_2, window_bounds = array<i64: 1, 512>}, {pipeline_mode = #tpu.pipeline_mode<synchronous>, transform_indices = @transform_3, window_bounds = array<i64: 512, 384>}, {pipeline_mode = #tpu.pipeline_mode<synchronous>, transform_indices = @transform_4, window_bounds = array<i64: 1, 384>}, {pipeline_mode = #tpu.pipeline_mode<synchronous>, transform_indices = @transform_5, window_bounds = array<i64: 1, 384>}, {transform_indices = @transform_6, window_bounds = array<i64: 1, 1>}, {transform_indices = @transform_7, window_bounds = array<i64: 1, 1, 8>}]} {
    %c0 = arith.constant 0 : index
    %c0_0 = arith.constant 0 : index
    %0 = vector.load %arg1[%c0, %c0_0] : memref<8x12xf32, #tpu.memory_space<vmem>>, vector<8x12xf32>
    %c0_1 = arith.constant 0 : index
    %c0_2 = arith.constant 0 : index
    %1 = vector.load %arg2[%c0_1, %c0_2] : memref<12x512xf32, #tpu.memory_space<vmem>>, vector<12x512xf32>
    %cst = arith.constant dense<0.000000e+00> : vector<8x512xf32>
    %2 = tpu.matmul %0, %1, %cst {dimension_numbers = #tpu.dot_dimension_numbers<[1], [0], [0], [1], [0, 0, 1, 1], [], []>} : vector<8x12xf32>, vector<12x512xf32>, vector<8x512xf32> -> vector<8x512xf32>
    %c0_3 = arith.constant 0 : index
    %c0_4 = arith.constant 0 : index
    %3 = vector.load %arg3[%c0_3, %c0_4] : memref<1x512xf32, #tpu.memory_space<vmem>>, vector<1x512xf32>
    %4 = vector.broadcast %3 : vector<1x512xf32> to vector<8x512xf32>
    %5 = arith.addf %2, %4 : vector<8x512xf32>
    %cst_5 = arith.constant 0.000000e+00 : f32
    %6 = vector.broadcast %cst_5 : f32 to vector<8x512xf32>
    %7 = arith.maximumf %5, %6 : vector<8x512xf32>
    %c0_6 = arith.constant 0 : index
    %c0_7 = arith.constant 0 : index
    %8 = vector.load %arg4[%c0_6, %c0_7] : memref<512x384xf32, #tpu.memory_space<vmem>>, vector<512x384xf32>
    %cst_8 = arith.constant dense<0.000000e+00> : vector<8x384xf32>
    %9 = tpu.matmul %7, %8, %cst_8 {dimension_numbers = #tpu.dot_dimension_numbers<[1], [0], [0], [1], [0, 0, 1, 1], [], []>} : vector<8x512xf32>, vector<512x384xf32>, vector<8x384xf32> -> vector<8x384xf32>
    %c0_9 = arith.constant 0 : index
    %c0_10 = arith.constant 0 : index
    %10 = vector.load %arg5[%c0_9, %c0_10] : memref<1x384xf32, #tpu.memory_space<vmem>>, vector<1x384xf32>
    %11 = vector.broadcast %10 : vector<1x384xf32> to vector<8x384xf32>
    %12 = arith.addf %9, %11 : vector<8x384xf32>
    %cst_11 = arith.constant 0.000000e+00 : f32
    %13 = vector.broadcast %cst_11 : f32 to vector<8x384xf32>
    %14 = arith.maximumf %12, %13 : vector<8x384xf32>
    %c0_12 = arith.constant 0 : index
    %c0_13 = arith.constant 0 : index
    %15 = vector.load %arg6[%c0_12, %c0_13] : memref<1x384xf32, #tpu.memory_space<vmem>>, vector<1x384xf32>
    %16 = vector.broadcast %15 : vector<1x384xf32> to vector<8x384xf32>
    %17 = arith.mulf %14, %16 : vector<8x384xf32>
    %cst_14 = arith.constant dense<0.000000e+00> : vector<8xf32>
    %18 = vector.multi_reduction <add>, %17, %cst_14 [1] : vector<8x384xf32> to vector<8xf32>
    %19 = vector.shape_cast %18 : vector<8xf32> to vector<8x1xf32>
    %c0_15 = arith.constant 0 : index
    %c0_16 = arith.constant 0 : index
    %20 = memref.load %arg7[%c0_15, %c0_16] : memref<1x1xf32, #tpu.memory_space<smem>>
    %21 = vector.broadcast %20 : f32 to vector<8x1xf32>
    %22 = arith.addf %19, %21 : vector<8x1xf32>
    %23 = tpu.transpose %22, [1, 0] : vector<8x1xf32> -> vector<1x8xf32>
    %24 = vector.shape_cast %23 : vector<1x8xf32> to vector<1x1x8xf32>
    %c0_17 = arith.constant 0 : index
    %c0_18 = arith.constant 0 : index
    %c0_19 = arith.constant 0 : index
    %25 = vector.load %arg8[%c0_17, %c0_18, %c0_19] : memref<1x1x8xf32, #tpu.memory_space<vmem>>, vector<1x1x8xf32>
    tpu.vector_store %arg8[%c0_17, %c0_18, %c0_19], %24 {strides = array<i32>} : memref<1x1x8xf32, #tpu.memory_space<vmem>>, vector<1x1x8xf32>,
    return
  }
  func.func @transform_0(%arg0: i32) -> (i32, i32) {
    %c0_i32 = arith.constant 0 : i32
    %c0_i32_0 = arith.constant 0 : i32
    return %arg0, %c0_i32 : i32, i32
  }
  func.func @transform_1(%arg0: i32) -> (i32, i32) {
    %c0_i32 = arith.constant 0 : i32
    %c0_i32_0 = arith.constant 0 : i32
    %c0_i32_1 = arith.constant 0 : i32
    return %c0_i32, %c0_i32_0 : i32, i32
  }
  func.func @transform_2(%arg0: i32) -> (i32, i32) {
    %c0_i32 = arith.constant 0 : i32
    %c0_i32_0 = arith.constant 0 : i32
    %c0_i32_1 = arith.constant 0 : i32
    return %c0_i32, %c0_i32_0 : i32, i32
  }
  func.func @transform_3(%arg0: i32) -> (i32, i32) {
    %c0_i32 = arith.constant 0 : i32
    %c0_i32_0 = arith.constant 0 : i32
    %c0_i32_1 = arith.constant 0 : i32
    return %c0_i32, %c0_i32_0 : i32, i32
  }
  func.func @transform_4(%arg0: i32) -> (i32, i32) {
    %c0_i32 = arith.constant 0 : i32
    %c0_i32_0 = arith.constant 0 : i32
    %c0_i32_1 = arith.constant 0 : i32
    return %c0_i32, %c0_i32_0 : i32, i32
  }
  func.func @transform_5(%arg0: i32) -> (i32, i32) {
    %c0_i32 = arith.constant 0 : i32
    %c0_i32_0 = arith.constant 0 : i32
    %c0_i32_1 = arith.constant 0 : i32
    return %c0_i32, %c0_i32_0 : i32, i32
  }
  func.func @transform_6(%arg0: i32) -> (i32, i32) {
    %c0_i32 = arith.constant 0 : i32
    %c0_i32_0 = arith.constant 0 : i32
    %c0_i32_1 = arith.constant 0 : i32
    return %c0_i32, %c0_i32_0 : i32, i32
  }
  func.func @transform_7(%arg0: i32) -> (i32, i32, i32) {
    %c0_i32 = arith.constant 0 : i32
    %c0_i32_0 = arith.constant 0 : i32
    %c0_i32_1 = arith.constant 0 : i32
    return %arg0, %c0_i32, %c0_i32_0 : i32, i32, i32
  }
}

</mosaic_0001>

<bundles_post_ra>
// kernel: tpu_custom_call.1
= control target key start
LH: loop header
LB: loop body
LE: loop exit
PB: predicated region body
PF: predicated region fallthrough
CT: control target
= control target key end

     0   :  { %13 = vsyncpa [#allocation4], 0  ;;  %s960_s0 = inlined_call_operand.hbm [shape: f32[8,12], index: 0, kind: input, shape index: {}]   ;;  %s961_s1 = inlined_call_operand.hbm [shape: f32[12,512], index: 1, kind: input, shape index: {}]   ;;  %s962_s2 = inlined_call_operand.hbm [shape: f32[1,512], index: 2, kind: input, shape index: {}]   ;;  %s963_s3 = inlined_call_operand.hbm [shape: f32[512,384], index: 3, kind: input, shape index: {}]   ;;  %s964_s4 = inlined_call_operand.vmem [shape: f32[1,384], index: 4, kind: input, shape index: {}]   ;;  %s965_s5 = inlined_call_operand.vmem [shape: f32[1,384], index: 5, kind: input, shape index: {}]   ;;  %s966_s6 = inlined_call_operand.<no memory space> [shape: f32[1,1], index: 6, kind: input, shape index: {}]   ;;  %s967_s7 = inlined_call_operand.hbm [shape: f32[1,1,8], index: 7, kind: output, shape index: {}]  }
   0x1   :  { %14 = vsyncpa [#allocation7], 0 }
   0x2   :  { %15 = vsyncpa [#allocation10], 0  ;;  %s32_s26 = sshll.u32 %s961_s1, 4  ;;  %s33_s26 = int_to_ptr.hbm [resolvable:$true] %s32_s26 }
   0x3   :  { %16 = vsyncpa [#allocation5], 0  ;;  %s867_s27 = smov [#allocation6]   ;;  %s22_s8 = sshll.u32 %s960_s0, 4  ;;  %s23_s8 = int_to_ptr.hbm [resolvable:$true] %s22_s8 }
   0x4   :  { %s34_s28 = sshll.u32 %s867_s27, 4  ;;  %s868_s9 = smov 512   ;;  %s35_s28 = int_to_ptr.vmem [resolvable:$true] %s34_s28 }
   0x5   :  { %s869_s10 = smov 32   ;;  %s870_s11 = smov [#allocation3]  }
   0x6   :  { %40 = dma.hbm_to_vmem [thread:$0]  %s33_s26, 1024, %s35_s28, [#allocation7], %s868_s9, %s868_s9, %s869_s10  }
   0x7   :  { %s24_s12 = sshll.u32 %s870_s11, 4  ;;  %s46_s15 = sshll.u32 %s962_s2, 4  ;;  %s25_s12 = int_to_ptr.vmem [resolvable:$true] %s24_s12  ;;  %s47_s15 = int_to_ptr.hbm [resolvable:$true] %s46_s15 }
   0x8   :  { %27 = dma.hbm_to_vmem [thread:$0]  %s23_s8, 128, %s25_s12, [#allocation4]  }
   0x9   :  { %s56_s17 = sshll.u32 %s963_s3, 4  ;;  %s871_s18 = smov [#allocation8]   ;;  %s57_s17 = int_to_ptr.hbm [resolvable:$true] %s56_s17 }
   0xa   :  { %s48_s19 = sshll.u32 %s871_s18, 4  ;;  %s872_s0 = smov [#allocation9]   ;;  %s49_s19 = int_to_ptr.vmem [resolvable:$true] %s48_s19 }
   0xb   :  { %51 = dma.hbm_to_vmem [thread:$0]  %s47_s15, 64, %s49_s19, [#allocation7]  }
   0xc   :  { %s58_s20 = sshll.u32 %s872_s0, 4  ;;  %s873_s21 = smov 384   ;;  %s59_s20 = int_to_ptr.vmem [resolvable:$true] %s58_s20 }
   0xd   :  { %s874_s22 = smov 24  }
   0xe   :  { %64 = dma.hbm_to_vmem [thread:$0]  %s57_s17, 24576, %s59_s20, [#allocation10], %s873_s21, %s873_s21, %s874_s22  }
   0xf   :  { %859 = dma.done.wait [#allocation4], 128  }
  0x10   :  { %860 = vsyncadd [#allocation4], 4294967168 }
  0x11   :  { %861 = dma.done.wait [#allocation7], 1088  }
  0x12   :  { %862 = vsyncadd [#allocation7], 4294966208 }
  0x13   :  { %863 = dma.done.wait [#allocation10], 24576  }
  0x14   :  { %864 = vsyncadd [#allocation10], 4294942720  ;;  %vm110_vm0 = vcmask 1043456   ;;  %v92_v0 = vld [vmem:[#allocation6 + $0x20] sm:$0xf]  ;;  %v89_v5 = vld [vmem:[#allocation6 + $0x8] sm:$0xff] }
  0x15   :  { %v93_v1 = vld [vmem:[#allocation6 + $0x28] sm:$0xf]  ;;  %v94_v2 = vld [vmem:[#allocation6 + $0x30] sm:$0xf]  ;;  %721 = vmatpush.msk.msra.mxu0 %vm110_vm0, %v92_v0  ;;  %v95_v3 = vld [vmem:[#allocation6 + $0x38] sm:$0xf] }
  0x16   :  { %723 = vmatpush.msk.msra.mxu1 %vm110_vm0, %v93_v1  ;;  %v88_v4 = vld [vmem:[#allocation6] sm:$0xff]  ;;  %725 = vmatpush.msk.msra.mxu2 %vm110_vm0, %v94_v2  ;;  %v90_v6 = vld [vmem:[#allocation6 + $0x10] sm:$0xff]  ;;  %v91_v7 = vld [vmem:[#allocation6 + $0x18] sm:$0xff]  ;;  %vm106_vm1 = vcmask 97280   ;;  %s875_s25 = smov [#allocation11]   ;;  %s709_s29 = sshll.u32 %s967_s7, 4  ;;  %s710_s29 = int_to_ptr.hbm [resolvable:$true] %s709_s29 }
  0x17   :  { %727 = vmatpush.msk.msra.mxu3 %vm110_vm0, %v95_v3  ;;  %v87_v8 = vld [vmem:[#allocation3] sm:$0xff]  ;;  %138 = vmatpush.msra.mxu0 %v88_v4  ;;  %v252_v9 = vld [vmem:[#allocation9 + $0x168] sm:$0xff]  ;;  %v243_v21 = vld [vmem:[#allocation9 + $0x120] sm:$0xff]  ;;  %s707_s26 = sshll.u32 %s875_s25, 4  ;;  %vm700_vm2 = vcmask 57344   ;;  %s708_s26 = int_to_ptr.vmem [resolvable:$true] %s707_s26 }
  0x18   :  { %158 = vmatpush.msra.mxu1 %v89_v5  ;;  %178 = vmatpush.msra.mxu2 %v90_v6  ;;  %v300_v10 = vld [vmem:[#allocation9 + $0x2e8] sm:$0xff]  ;;  %v249_v12 = vld [vmem:[#allocation9 + $0x150] sm:$0xff]  ;;  %v246_v17 = vld [vmem:[#allocation9 + $0x138] sm:$0xff] }
  0x19   :  { %198 = vmatpush.msra.mxu3 %v91_v7  ;;  %722 = vmatmul.msk.f32.vlgmr.msra.gmra.mxu0 %vm106_vm1, %v87_v8  ;;  %v348_v11 = vld [vmem:[#allocation9 + $0x468] sm:$0xff]  ;;  %v297_v13 = vld [vmem:[#allocation9 + $0x2d0] sm:$0xff]  ;;  %v294_v18 = vld [vmem:[#allocation9 + $0x2b8] sm:$0xff] }
  0x1a   :  { %724 = vmatmul.msk.f32.vlgmr.msra.gmra.mxu1 %vm106_vm1, %v87_v8  ;;  %726 = vmatmul.msk.f32.vlgmr.msra.gmra.mxu2 %vm106_vm1, %v87_v8  ;;  %v396_v14 = vld [vmem:[#allocation9 + $0x5e8] sm:$0xff]  ;;  %v345_v15 = vld [vmem:[#allocation9 + $0x450] sm:$0xff]  ;;  %v342_v19 = vld [vmem:[#allocation9 + $0x438] sm:$0xff] }
  0x1b   :  { %728 = vmatmul.msk.f32.vlgmr.msra.gmra.mxu3 %vm106_vm1, %v87_v8  ;;  %407 = vmatpush.msrb.mxu0 %v252_v9  ;;  %v393_v16 = vld [vmem:[#allocation9 + $0x5d0] sm:$0xff]  ;;  %v390_v20 = vld [vmem:[#allocation9 + $0x5b8] sm:$0xff]  ;;  %v291_v22 = vld [vmem:[#allocation9 + $0x2a0] sm:$0xff] }
  0x1c   :  { %427 = vmatpush.msrb.mxu1 %v300_v10  ;;  %447 = vmatpush.msrb.mxu2 %v348_v11  ;;  %v339_v23 = vld [vmem:[#allocation9 + $0x420] sm:$0xff]  ;;  %v240_v25 = vld [vmem:[#allocation9 + $0x108] sm:$0xff]  ;;  %v237_v29 = vld [vmem:[#allocation9 + $0xf0] sm:$0xff] }
  0x1d   :  { %467 = vmatpush.msrb.mxu3 %v396_v14  ;;  %408 = vmatpush.msrb.mxu0 %v249_v12  ;;  %v387_v24 = vld [vmem:[#allocation9 + $0x5a0] sm:$0xff]  ;;  %v288_v26 = vld [vmem:[#allocation9 + $0x288] sm:$0xff]  ;;  %v285_v30 = vld [vmem:[#allocation9 + $0x270] sm:$0xff] }
  0x1e   :  { %428 = vmatpush.msrb.mxu1 %v297_v13  ;;  %448 = vmatpush.msrb.mxu2 %v345_v15  ;;  %v336_v27 = vld [vmem:[#allocation9 + $0x408] sm:$0xff]  ;;  %v333_v31 = vld [vmem:[#allocation9 + $0x3f0] sm:$0xff]  ;;  %v234_v33 = vld [vmem:[#allocation9 + $0xd8] sm:$0xff] }
  0x1f   :  { %468 = vmatpush.msrb.mxu3 %v393_v16  ;;  %409 = vmatpush.msrb.mxu0 %v246_v17  ;;  %v384_v28 = vld [vmem:[#allocation9 + $0x588] sm:$0xff]  ;;  %v381_v32 = vld [vmem:[#allocation9 + $0x570] sm:$0xff]  ;;  %v282_v34 = vld [vmem:[#allocation9 + $0x258] sm:$0xff] }
  0x20   :  { %429 = vmatpush.msrb.mxu1 %v294_v18  ;;  %449 = vmatpush.msrb.mxu2 %v342_v19  ;;  %v330_v35 = vld [vmem:[#allocation9 + $0x3d8] sm:$0xff]  ;;  %v231_v37 = vld [vmem:[#allocation9 + $0xc0] sm:$0xff]  ;;  %v228_v41 = vld [vmem:[#allocation9 + $0xa8] sm:$0xff] }
  0x21   :  { %469 = vmatpush.msrb.mxu3 %v390_v20  ;;  %410 = vmatpush.msrb.mxu0 %v243_v21  ;;  %v378_v36 = vld [vmem:[#allocation9 + $0x558] sm:$0xff]  ;;  %v279_v38 = vld [vmem:[#allocation9 + $0x240] sm:$0xff]  ;;  %v276_v42 = vld [vmem:[#allocation9 + $0x228] sm:$0xff] }
  0x22   :  { %430 = vmatpush.msrb.mxu1 %v291_v22  ;;  %450 = vmatpush.msrb.mxu2 %v339_v23  ;;  %v327_v39 = vld [vmem:[#allocation9 + $0x3c0] sm:$0xff]  ;;  %v324_v43 = vld [vmem:[#allocation9 + $0x3a8] sm:$0xff]  ;;  %v225_v45 = vld [vmem:[#allocation9 + $0x90] sm:$0xff] }
  0x23   :  { %470 = vmatpush.msrb.mxu3 %v387_v24  ;;  %411 = vmatpush.msrb.mxu0 %v240_v25  ;;  %v375_v40 = vld [vmem:[#allocation9 + $0x540] sm:$0xff]  ;;  %v372_v44 = vld [vmem:[#allocation9 + $0x528] sm:$0xff]  ;;  %v273_v46 = vld [vmem:[#allocation9 + $0x210] sm:$0xff] }
  0x24   :  { %431 = vmatpush.msrb.mxu1 %v288_v26  ;;  %451 = vmatpush.msrb.mxu2 %v336_v27  ;;  %v321_v47 = vld [vmem:[#allocation9 + $0x390] sm:$0xff]  ;;  %v222_v49 = vld [vmem:[#allocation9 + $0x78] sm:$0xff]  ;;  %v219_v53 = vld [vmem:[#allocation9 + $0x60] sm:$0xff] }
  0x25   :  { %471 = vmatpush.msrb.mxu3 %v384_v28  ;;  %412 = vmatpush.msrb.mxu0 %v237_v29  ;;  %v369_v48 = vld [vmem:[#allocation9 + $0x510] sm:$0xff]  ;;  %v270_v50 = vld [vmem:[#allocation9 + $0x1f8] sm:$0xff]  ;;  %v267_v54 = vld [vmem:[#allocation9 + $0x1e0] sm:$0xff] }
  0x26   :  { %432 = vmatpush.msrb.mxu1 %v285_v30  ;;  %452 = vmatpush.msrb.mxu2 %v333_v31  ;;  %v318_v51 = vld [vmem:[#allocation9 + $0x378] sm:$0xff]  ;;  %v315_v55 = vld [vmem:[#allocation9 + $0x360] sm:$0xff]  ;;  %v216_v57 = vld [vmem:[#allocation9 + $0x48] sm:$0xff] }
  0x27   :  { %472 = vmatpush.msrb.mxu3 %v381_v32  ;;  %413 = vmatpush.msrb.mxu0 %v234_v33  ;;  %v366_v52 = vld [vmem:[#allocation9 + $0x4f8] sm:$0xff]  ;;  %v363_v56 = vld [vmem:[#allocation9 + $0x4e0] sm:$0xff]  ;;  %v264_v58 = vld [vmem:[#allocation9 + $0x1c8] sm:$0xff] }
  0x28   :  { %433 = vmatpush.msrb.mxu1 %v282_v34  ;;  %453 = vmatpush.msrb.mxu2 %v330_v35  ;;  %v312_v59 = vld [vmem:[#allocation9 + $0x348] sm:$0xff]  ;;  %v213_v61 = vld [vmem:[#allocation9 + $0x30] sm:$0xff]  ;;  %v210_v1 = vld [vmem:[#allocation9 + $0x18] sm:$0xff] }
  0x29   :  { %473 = vmatpush.msrb.mxu3 %v378_v36  ;;  %414 = vmatpush.msrb.mxu0 %v231_v37  ;;  %v360_v60 = vld [vmem:[#allocation9 + $0x4c8] sm:$0xff]  ;;  %v261_v62 = vld [vmem:[#allocation9 + $0x1b0] sm:$0xff]  ;;  %v258_v2 = vld [vmem:[#allocation9 + $0x198] sm:$0xff] }
  0x2a   :  { %434 = vmatpush.msrb.mxu1 %v279_v38  ;;  %454 = vmatpush.msrb.mxu2 %v327_v39  ;;  %v309_v63 = vld [vmem:[#allocation9 + $0x330] sm:$0xff]  ;;  %v306_v3 = vld [vmem:[#allocation9 + $0x318] sm:$0xff]  ;;  %v207_v5 = vld [vmem:[#allocation9] sm:$0xff] }
  0x2b   :  { %474 = vmatpush.msrb.mxu3 %v375_v40  ;;  %415 = vmatpush.msrb.mxu0 %v228_v41  ;;  %v357_v0 = vld [vmem:[#allocation9 + $0x4b0] sm:$0xff]  ;;  %v354_v4 = vld [vmem:[#allocation9 + $0x498] sm:$0xff]  ;;  %v255_v6 = vld [vmem:[#allocation9 + $0x180] sm:$0xff] }
  0x2c   :  { %435 = vmatpush.msrb.mxu1 %v276_v42  ;;  %455 = vmatpush.msrb.mxu2 %v324_v43  ;;  %v253_v7 = vld [vmem:[#allocation9 + $0x170] sm:$0xff]  ;;  %v303_v9 = vld [vmem:[#allocation9 + $0x300] sm:$0xff]  ;;  %v250_v11 = vld [vmem:[#allocation9 + $0x158] sm:$0xff] }
  0x2d   :  { %475 = vmatpush.msrb.mxu3 %v372_v44  ;;  %416 = vmatpush.msrb.mxu0 %v225_v45  ;;  %v301_v8 = vld [vmem:[#allocation9 + $0x2f0] sm:$0xff]  ;;  %v351_v10 = vld [vmem:[#allocation9 + $0x480] sm:$0xff]  ;;  %v298_v12 = vld [vmem:[#allocation9 + $0x2d8] sm:$0xff] }
  0x2e   :  { %436 = vmatpush.msrb.mxu1 %v273_v46  ;;  %456 = vmatpush.msrb.mxu2 %v321_v47  ;;  %v349_v13 = vld [vmem:[#allocation9 + $0x470] sm:$0xff]  ;;  %v247_v15 = vld [vmem:[#allocation9 + $0x140] sm:$0xff]  ;;  %v346_v17 = vld [vmem:[#allocation9 + $0x458] sm:$0xff] }
  0x2f   :  { %476 = vmatpush.msrb.mxu3 %v369_v48  ;;  %417 = vmatpush.msrb.mxu0 %v222_v49  ;;  %v397_v14 = vld [vmem:[#allocation9 + $0x5f0] sm:$0xff]  ;;  %v295_v16 = vld [vmem:[#allocation9 + $0x2c0] sm:$0xff]  ;;  %v394_v18 = vld [vmem:[#allocation9 + $0x5d8] sm:$0xff] }
  0x30   :  { %437 = vmatpush.msrb.mxu1 %v270_v50  ;;  %457 = vmatpush.msrb.mxu2 %v318_v51  ;;  %v244_v19 = vld [vmem:[#allocation9 + $0x128] sm:$0xff]  ;;  %v343_v21 = vld [vmem:[#allocation9 + $0x440] sm:$0xff]  ;;  %v241_v23 = vld [vmem:[#allocation9 + $0x110] sm:$0xff] }
  0x31   :  { %477 = vmatpush.msrb.mxu3 %v366_v52  ;;  %418 = vmatpush.msrb.mxu0 %v219_v53  ;;  %v292_v20 = vld [vmem:[#allocation9 + $0x2a8] sm:$0xff]  ;;  %v391_v22 = vld [vmem:[#allocation9 + $0x5c0] sm:$0xff]  ;;  %v289_v24 = vld [vmem:[#allocation9 + $0x290] sm:$0xff] }
  0x32   :  { %438 = vmatpush.msrb.mxu1 %v267_v54  ;;  %458 = vmatpush.msrb.mxu2 %v315_v55  ;;  %v340_v25 = vld [vmem:[#allocation9 + $0x428] sm:$0xff]  ;;  %v238_v27 = vld [vmem:[#allocation9 + $0xf8] sm:$0xff]  ;;  %v337_v29 = vld [vmem:[#allocation9 + $0x410] sm:$0xff] }
  0x33   :  { %478 = vmatpush.msrb.mxu3 %v363_v56  ;;  %419 = vmatpush.msrb.mxu0 %v216_v57  ;;  %v388_v26 = vld [vmem:[#allocation9 + $0x5a8] sm:$0xff]  ;;  %v286_v28 = vld [vmem:[#allocation9 + $0x278] sm:$0xff]  ;;  %v385_v30 = vld [vmem:[#allocation9 + $0x590] sm:$0xff] }
  0x34   :  { %439 = vmatpush.msrb.mxu1 %v264_v58  ;;  %459 = vmatpush.msrb.mxu2 %v312_v59  ;;  %v235_v31 = vld [vmem:[#allocation9 + $0xe0] sm:$0xff]  ;;  %v334_v33 = vld [vmem:[#allocation9 + $0x3f8] sm:$0xff]  ;;  %v232_v35 = vld [vmem:[#allocation9 + $0xc8] sm:$0xff] }
  0x35   :  { %479 = vmatpush.msrb.mxu3 %v360_v60  ;;  %420 = vmatpush.msrb.mxu0 %v213_v61  ;;  %v283_v32 = vld [vmem:[#allocation9 + $0x260] sm:$0xff]  ;;  %v382_v34 = vld [vmem:[#allocation9 + $0x578] sm:$0xff]  ;;  %v280_v36 = vld [vmem:[#allocation9 + $0x248] sm:$0xff] }
  0x36   :  { %440 = vmatpush.msrb.mxu1 %v261_v62  ;;  %460 = vmatpush.msrb.mxu2 %v309_v63  ;;  %v331_v37 = vld [vmem:[#allocation9 + $0x3e0] sm:$0xff]  ;;  %v229_v39 = vld [vmem:[#allocation9 + $0xb0] sm:$0xff]  ;;  %v328_v41 = vld [vmem:[#allocation9 + $0x3c8] sm:$0xff] }
  0x37   :  { %480 = vmatpush.msrb.mxu3 %v357_v0  ;;  %421 = vmatpush.msrb.mxu0 %v210_v1  ;;  %v379_v38 = vld [vmem:[#allocation9 + $0x560] sm:$0xff]  ;;  %v277_v40 = vld [vmem:[#allocation9 + $0x230] sm:$0xff]  ;;  %v376_v42 = vld [vmem:[#allocation9 + $0x548] sm:$0xff] }
  0x38   :  { %441 = vmatpush.msrb.mxu1 %v258_v2  ;;  %461 = vmatpush.msrb.mxu2 %v306_v3  ;;  %v226_v43 = vld [vmem:[#allocation9 + $0x98] sm:$0xff]  ;;  %v325_v45 = vld [vmem:[#allocation9 + $0x3b0] sm:$0xff]  ;;  %v223_v47 = vld [vmem:[#allocation9 + $0x80] sm:$0xff] }
  0x39   :  { %481 = vmatpush.msrb.mxu3 %v354_v4  ;;  %422 = vmatpush.msrb.mxu0 %v207_v5  ;;  %v274_v44 = vld [vmem:[#allocation9 + $0x218] sm:$0xff]  ;;  %v373_v46 = vld [vmem:[#allocation9 + $0x530] sm:$0xff]  ;;  %v271_v48 = vld [vmem:[#allocation9 + $0x200] sm:$0xff] }
  0x3a   :  { %442 = vmatpush.msrb.mxu1 %v255_v6  ;;  %462 = vmatpush.msrb.mxu2 %v303_v9  ;;  %v322_v49 = vld [vmem:[#allocation9 + $0x398] sm:$0xff]  ;;  %v220_v51 = vld [vmem:[#allocation9 + $0x68] sm:$0xff]  ;;  %v217_v53 = vld [vmem:[#allocation9 + $0x50] sm:$0xff] }
  0x3b   :  { %487 = vmatpush.msra.mxu0 %v253_v7  ;;  %482 = vmatpush.msrb.mxu3 %v351_v10  ;;  %v370_v50 = vld [vmem:[#allocation9 + $0x518] sm:$0xff]  ;;  %v268_v52 = vld [vmem:[#allocation9 + $0x1e8] sm:$0xff]  ;;  %v265_v54 = vld [vmem:[#allocation9 + $0x1d0] sm:$0xff] }
  0x3c   :  { %507 = vmatpush.msra.mxu1 %v301_v8  ;;  %527 = vmatpush.msra.mxu2 %v349_v13  ;;  %v214_v55 = vld [vmem:[#allocation9 + $0x38] sm:$0xff]  ;;  %v319_v57 = vld [vmem:[#allocation9 + $0x380] sm:$0xff]  ;;  %v316_v61 = vld [vmem:[#allocation9 + $0x368] sm:$0xff] }
  0x3d   :  { %488 = vmatpush.msra.mxu0 %v250_v11  ;;  %547 = vmatpush.msra.mxu3 %v397_v14  ;;  %v262_v56 = vld [vmem:[#allocation9 + $0x1b8] sm:$0xff]  ;;  %v367_v58 = vld [vmem:[#allocation9 + $0x500] sm:$0xff]  ;;  %v364_v62 = vld [vmem:[#allocation9 + $0x4e8] sm:$0xff] }
  0x3e   :  { %508 = vmatpush.msra.mxu1 %v298_v12  ;;  %528 = vmatpush.msra.mxu2 %v346_v17  ;;  %v211_v59 = vld [vmem:[#allocation9 + $0x20] sm:$0xff]  ;;  %v208_v63 = vld [vmem:[#allocation9 + $0x8] sm:$0xff]  ;;  %v313_v1 = vld [vmem:[#allocation9 + $0x350] sm:$0xff] }
  0x3f   :  { %489 = vmatpush.msra.mxu0 %v247_v15  ;;  %548 = vmatpush.msra.mxu3 %v394_v18  ;;  %v259_v60 = vld [vmem:[#allocation9 + $0x1a0] sm:$0xff]  ;;  %v256_v0 = vld [vmem:[#allocation9 + $0x188] sm:$0xff]  ;;  %v361_v2 = vld [vmem:[#allocation9 + $0x4d0] sm:$0xff] }
  0x40   :  { %509 = vmatpush.msra.mxu1 %v295_v16  ;;  %529 = vmatpush.msra.mxu2 %v343_v21  ;;  %v310_v3 = vld [vmem:[#allocation9 + $0x338] sm:$0xff]  ;;  %v307_v5 = vld [vmem:[#allocation9 + $0x320] sm:$0xff]  ;;  %v304_v7 = vld [vmem:[#allocation9 + $0x308] sm:$0xff] }
  0x41   :  { %490 = vmatpush.msra.mxu0 %v244_v19  ;;  %549 = vmatpush.msra.mxu3 %v391_v22  ;;  %v358_v4 = vld [vmem:[#allocation9 + $0x4b8] sm:$0xff]  ;;  %v355_v6 = vld [vmem:[#allocation9 + $0x4a0] sm:$0xff]  ;;  %v352_v8 = vld [vmem:[#allocation9 + $0x488] sm:$0xff] }
  0x42   :  { %510 = vmatpush.msra.mxu1 %v292_v20  ;;  %530 = vmatpush.msra.mxu2 %v340_v25  ;;  %v96_v9 = vld [vmem:[#allocation8] sm:$0xf]  ;;  %v251_v22 = vld [vmem:[#allocation9 + $0x160] sm:$0xff] }
  0x43   :  { %491 = vmatpush.msra.mxu0 %v241_v23  ;;  %550 = vmatpush.msra.mxu3 %v388_v26  ;;  %v98_v10 = vperm.slane %v96_v9, 0  ;;  %v99_v11 = vperm.slane %v96_v9, 1  ;;  %v254_v18 = vld [vmem:[#allocation9 + $0x178] sm:$0xff]  ;;  %v100_v20 = vperm.slane %v96_v9, 2  ;;  %v101_v21 = vperm.slane %v96_v9, 3  ;;  %v299_v23 = vld [vmem:[#allocation9 + $0x2e0] sm:$0xff] }
  0x44   :  { %511 = vmatpush.msra.mxu1 %v289_v24  ;;  %531 = vmatpush.msra.mxu2 %v337_v29  ;;  %v302_v19 = vld [vmem:[#allocation9 + $0x2f8] sm:$0xff]  ;;  %v248_v26 = vld [vmem:[#allocation9 + $0x148] sm:$0xff]  ;;  %v263_v9 = vld [vmem:[#allocation9 + $0x1c0] sm:$0xff] }
  0x45   :  { %492 = vmatpush.msra.mxu0 %v238_v27  ;;  %551 = vmatpush.msra.mxu3 %v385_v30  ;;  %v296_v27 = vld [vmem:[#allocation9 + $0x2c8] sm:$0xff] }
  0x46   :  { %512 = vmatpush.msra.mxu1 %v286_v28  ;;  %532 = vmatpush.msra.mxu2 %v334_v33  ;;  %v293_v33 = vld [vmem:[#allocation9 + $0x2b0] sm:$0xff] }
  0x47   :  { %493 = vmatpush.msra.mxu0 %v235_v31  ;;  %552 = vmatpush.msra.mxu3 %v382_v34  ;;  %v350_v34 = vld [vmem:[#allocation9 + $0x478] sm:$0xff] }
  0x48   :  { %513 = vmatpush.msra.mxu1 %v283_v32  ;;  %533 = vmatpush.msra.mxu2 %v331_v37  ;;  %v245_v32 = vld [vmem:[#allocation9 + $0x130] sm:$0xff]  ;;  %v242_v37 = vld [vmem:[#allocation9 + $0x118] sm:$0xff] }
  0x49   :  { %494 = vmatpush.msra.mxu0 %v232_v35  ;;  %553 = vmatpush.msra.mxu3 %v379_v38  ;;  %v398_v35 = vld [vmem:[#allocation9 + $0x5f8] sm:$0xff]  ;;  %v347_v38 = vld [vmem:[#allocation9 + $0x460] sm:$0xff] }
  0x4a   :  { %514 = vmatpush.msra.mxu1 %v280_v36  ;;  %534 = vmatpush.msra.mxu2 %v328_v41  ;;  %v290_v36 = vld [vmem:[#allocation9 + $0x298] sm:$0xff]  ;;  %v287_v41 = vld [vmem:[#allocation9 + $0x280] sm:$0xff] }
  0x4b   :  { %495 = vmatpush.msra.mxu0 %v229_v39  ;;  %554 = vmatpush.msra.mxu3 %v376_v42  ;;  %v395_v39 = vld [vmem:[#allocation9 + $0x5e0] sm:$0xff]  ;;  %v344_v42 = vld [vmem:[#allocation9 + $0x448] sm:$0xff] }
  0x4c   :  { %515 = vmatpush.msra.mxu1 %v277_v40  ;;  %535 = vmatpush.msra.mxu2 %v325_v45  ;;  %v239_v40 = vld [vmem:[#allocation9 + $0x100] sm:$0xff]  ;;  %v284_v45 = vld [vmem:[#allocation9 + $0x268] sm:$0xff] }
  0x4d   :  { %496 = vmatpush.msra.mxu0 %v226_v43  ;;  %555 = vmatpush.msra.mxu3 %v373_v46  ;;  %v392_v43 = vld [vmem:[#allocation9 + $0x5c8] sm:$0xff]  ;;  %v341_v46 = vld [vmem:[#allocation9 + $0x430] sm:$0xff] }
  0x4e   :  { %516 = vmatpush.msra.mxu1 %v274_v44  ;;  %536 = vmatpush.msra.mxu2 %v322_v49  ;;  %v236_v44 = vld [vmem:[#allocation9 + $0xe8] sm:$0xff]  ;;  %v281_v49 = vld [vmem:[#allocation9 + $0x250] sm:$0xff] }
  0x4f   :  { %497 = vmatpush.msra.mxu0 %v223_v47  ;;  %556 = vmatpush.msra.mxu3 %v370_v50  ;;  %v389_v47 = vld [vmem:[#allocation9 + $0x5b0] sm:$0xff]  ;;  %v338_v50 = vld [vmem:[#allocation9 + $0x418] sm:$0xff] }
  0x50   :  { %517 = vmatpush.msra.mxu1 %v271_v48  ;;  %537 = vmatpush.msra.mxu2 %v319_v57  ;;  %v233_v48 = vld [vmem:[#allocation9 + $0xd0] sm:$0xff]  ;;  %v275_v57 = vld [vmem:[#allocation9 + $0x220] sm:$0xff] }
  0x51   :  { %498 = vmatpush.msra.mxu0 %v220_v51  ;;  %557 = vmatpush.msra.mxu3 %v367_v58  ;;  %v386_v51 = vld [vmem:[#allocation9 + $0x598] sm:$0xff]  ;;  %v332_v58 = vld [vmem:[#allocation9 + $0x3e8] sm:$0xff] }
  0x52   :  { %518 = vmatpush.msra.mxu1 %v268_v52  ;;  %538 = vmatpush.msra.mxu2 %v316_v61  ;;  %v230_v52 = vld [vmem:[#allocation9 + $0xb8] sm:$0xff]  ;;  %v272_v61 = vld [vmem:[#allocation9 + $0x208] sm:$0xff] }
  0x53   :  { %499 = vmatpush.msra.mxu0 %v217_v53  ;;  %558 = vmatpush.msra.mxu3 %v364_v62  ;;  %v278_v53 = vld [vmem:[#allocation9 + $0x238] sm:$0xff]  ;;  %v329_v62 = vld [vmem:[#allocation9 + $0x3d0] sm:$0xff] }
  0x54   :  { %519 = vmatpush.msra.mxu1 %v265_v54  ;;  %539 = vmatpush.msra.mxu2 %v313_v1  ;;  %v335_v54 = vld [vmem:[#allocation9 + $0x400] sm:$0xff]  ;;  %v269_v1 = vld [vmem:[#allocation9 + $0x1f0] sm:$0xff] }
  0x55   :  { %500 = vmatpush.msra.mxu0 %v214_v55  ;;  %559 = vmatpush.msra.mxu3 %v361_v2  ;;  %v383_v55 = vld [vmem:[#allocation9 + $0x580] sm:$0xff]  ;;  %v326_v2 = vld [vmem:[#allocation9 + $0x3b8] sm:$0xff] }
  0x56   :  { %520 = vmatpush.msra.mxu1 %v262_v56  ;;  %540 = vmatpush.msra.mxu2 %v310_v3  ;;  %v227_v56 = vld [vmem:[#allocation9 + $0xa0] sm:$0xff]  ;;  %v374_v3 = vld [vmem:[#allocation9 + $0x538] sm:$0xff] }
  0x57   :  { %501 = vmatpush.msra.mxu0 %v211_v59  ;;  %560 = vmatpush.msra.mxu3 %v358_v4  ;;  %v380_v59 = vld [vmem:[#allocation9 + $0x568] sm:$0xff]  ;;  %v218_v4 = vld [vmem:[#allocation9 + $0x58] sm:$0xff] }
  0x58   :  { %521 = vmatpush.msra.mxu1 %v259_v60  ;;  %541 = vmatpush.msra.mxu2 %v307_v5  ;;  %v224_v60 = vld [vmem:[#allocation9 + $0x88] sm:$0xff]  ;;  %v266_v5 = vld [vmem:[#allocation9 + $0x1d8] sm:$0xff] }
  0x59   :  { %502 = vmatpush.msra.mxu0 %v208_v63  ;;  %561 = vmatpush.msra.mxu3 %v355_v6  ;;  %v377_v63 = vld [vmem:[#allocation9 + $0x550] sm:$0xff]  ;;  %v323_v6 = vld [vmem:[#allocation9 + $0x3a0] sm:$0xff] }
  0x5a   :  { %522 = vmatpush.msra.mxu1 %v256_v0  ;;  %542 = vmatpush.msra.mxu2 %v304_v7  ;;  %v221_v0 = vld [vmem:[#allocation9 + $0x70] sm:$0xff]  ;;  %v371_v7 = vld [vmem:[#allocation9 + $0x520] sm:$0xff] }
  0x5b   :  { %562 = vmatpush.msra.mxu3 %v352_v8  ;;  %v215_v8 = vld [vmem:[#allocation9 + $0x40] sm:$0xff] }
  0x96   :  { %v140_v12 = vpop.f32.mrf.mxu0 }
  0x97   :  { %v160_v13 = vpop.f32.mrf.mxu1  ;;  %v141_v14 = vadd.f32 %v140_v12, %v98_v10  ;;  %v320_v10 = vld [vmem:[#allocation9 + $0x388] sm:$0xff] }
  0x98   :  { %v161_v15 = vadd.f32 %v160_v13, %v99_v11  ;;  %v368_v11 = vld [vmem:[#allocation9 + $0x508] sm:$0xff] }
  0x99   :  { %v928_v16 = vmax.f32 %v141_v14, 0.0  ;;  %v212_v12 = vld [vmem:[#allocation9 + $0x28] sm:$0xff]  ;;  %v317_v14 = vld [vmem:[#allocation9 + $0x370] sm:$0xff] }
  0x9a   :  { %v930_v17 = vmax.f32 %v161_v15, 0.0  ;;  %v260_v13 = vld [vmem:[#allocation9 + $0x1a8] sm:$0xff]  ;;  %v365_v15 = vld [vmem:[#allocation9 + $0x4f0] sm:$0xff] }
  0x9b   :  { %423 = vmatmul.f32.vlgmr.msrb.gmra.mxu0 %v928_v16 }
  0x9c   :  { %443 = vmatmul.f32.vlgmr.msrb.gmra.mxu1 %v930_v17  ;;  %567 = vmatpush.msrb.mxu0 %v254_v18  ;;  %v209_v18 = vld [vmem:[#allocation9 + $0x10] sm:$0xff] }
  0x9d   :  { %587 = vmatpush.msrb.mxu1 %v302_v19  ;;  %v180_v24 = vpop.f32.mrf.mxu2  ;;  %v257_v19 = vld [vmem:[#allocation9 + $0x190] sm:$0xff] }
  0x9e   :  { %v200_v25 = vpop.f32.mrf.mxu3  ;;  %v181_v28 = vadd.f32 %v180_v24, %v100_v20  ;;  %568 = vmatpush.msrb.mxu0 %v251_v22  ;;  %v314_v20 = vld [vmem:[#allocation9 + $0x358] sm:$0xff]  ;;  %v311_v22 = vld [vmem:[#allocation9 + $0x340] sm:$0xff]  ;;  %v308_v24 = vld [vmem:[#allocation9 + $0x328] sm:$0xff] }
  0x9f   :  { %v201_v29 = vadd.f32 %v200_v25, %v101_v21  ;;  %588 = vmatpush.msrb.mxu1 %v299_v23  ;;  %v362_v21 = vld [vmem:[#allocation9 + $0x4d8] sm:$0xff]  ;;  %v359_v23 = vld [vmem:[#allocation9 + $0x4c0] sm:$0xff]  ;;  %v356_v25 = vld [vmem:[#allocation9 + $0x4a8] sm:$0xff] }
  0xa0   :  { %v934_v30 = vmax.f32 %v181_v28, 0.0  ;;  %569 = vmatpush.msrb.mxu0 %v248_v26  ;;  %v305_v26 = vld [vmem:[#allocation9 + $0x310] sm:$0xff] }
  0xa1   :  { %v936_v31 = vmax.f32 %v201_v29, 0.0  ;;  %589 = vmatpush.msrb.mxu1 %v296_v27  ;;  %v353_v27 = vld [vmem:[#allocation9 + $0x490] sm:$0xff] }
  0xa2   :  { %463 = vmatmul.f32.vlgmr.msrb.gmra.mxu2 %v934_v30  ;;  %570 = vmatpush.msrb.mxu0 %v245_v32 }
  0xa3   :  { %483 = vmatmul.f32.vlgmr.msrb.gmra.mxu3 %v936_v31  ;;  %590 = vmatpush.msrb.mxu1 %v293_v33 }
  0xa4   :  { %607 = vmatpush.msrb.mxu2 %v350_v34  ;;  %627 = vmatpush.msrb.mxu3 %v398_v35 }
  0xa5   :  { %503 = vmatmul.f32.vlgmr.msra.gmra.mxu0 %v928_v16  ;;  %591 = vmatpush.msrb.mxu1 %v290_v36 }
  0xa6   :  { %571 = vmatpush.msrb.mxu0 %v242_v37  ;;  %608 = vmatpush.msrb.mxu2 %v347_v38 }
  0xa7   :  { %628 = vmatpush.msrb.mxu3 %v395_v39  ;;  %523 = vmatmul.f32.vlgmr.msra.gmra.mxu1 %v930_v17 }
  0xa8   :  { %572 = vmatpush.msrb.mxu0 %v239_v40  ;;  %592 = vmatpush.msrb.mxu1 %v287_v41 }
  0xa9   :  { %609 = vmatpush.msrb.mxu2 %v344_v42  ;;  %629 = vmatpush.msrb.mxu3 %v392_v43 }
  0xaa   :  { %573 = vmatpush.msrb.mxu0 %v236_v44  ;;  %593 = vmatpush.msrb.mxu1 %v284_v45 }
  0xab   :  { %610 = vmatpush.msrb.mxu2 %v341_v46  ;;  %630 = vmatpush.msrb.mxu3 %v389_v47 }
  0xac   :  { %543 = vmatmul.f32.vlgmr.msra.gmra.mxu2 %v934_v30  ;;  %563 = vmatmul.f32.vlgmr.msra.gmra.mxu3 %v936_v31 }
  0xad   :  { %574 = vmatpush.msrb.mxu0 %v233_v48  ;;  %594 = vmatpush.msrb.mxu1 %v281_v49  ;;  %v650_v48 = vld [vmem:[%s965_s5] sm:$0x7] }
  0xae   :  { %611 = vmatpush.msrb.mxu2 %v338_v50  ;;  %631 = vmatpush.msrb.mxu3 %v386_v51  ;;  %v653_v51 = vperm.slane %v650_v48, 1 }
  0xaf   :  { %575 = vmatpush.msrb.mxu0 %v230_v52  ;;  %595 = vmatpush.msrb.mxu1 %v278_v53 }
  0xb0   :  { %612 = vmatpush.msrb.mxu2 %v335_v54  ;;  %632 = vmatpush.msrb.mxu3 %v383_v55  ;;  %v652_v55 = vperm.slane %v650_v48, 0 }
  0xb1   :  { %576 = vmatpush.msrb.mxu0 %v227_v56  ;;  %596 = vmatpush.msrb.mxu1 %v275_v57 }
  0xb2   :  { %613 = vmatpush.msrb.mxu2 %v332_v58  ;;  %633 = vmatpush.msrb.mxu3 %v380_v59 }
  0xb3   :  { %577 = vmatpush.msrb.mxu0 %v224_v60  ;;  %597 = vmatpush.msrb.mxu1 %v272_v61  ;;  %v654_v60 = vperm.slane %v650_v48, 2 }
  0xb4   :  { %614 = vmatpush.msrb.mxu2 %v329_v62  ;;  %634 = vmatpush.msrb.mxu3 %v377_v63 }
  0xb5   :  { %578 = vmatpush.msrb.mxu0 %v221_v0  ;;  %598 = vmatpush.msrb.mxu1 %v269_v1 }
  0xb6   :  { %615 = vmatpush.msrb.mxu2 %v326_v2  ;;  %635 = vmatpush.msrb.mxu3 %v374_v3  ;;  %v666_v2 = vstv %s966_s6 }
  0xb7   :  { %579 = vmatpush.msrb.mxu0 %v218_v4  ;;  %599 = vmatpush.msrb.mxu1 %v266_v5 }
  0xb8   :  { %616 = vmatpush.msrb.mxu2 %v323_v6  ;;  %636 = vmatpush.msrb.mxu3 %v371_v7 }
  0xb9   :  { %580 = vmatpush.msrb.mxu0 %v215_v8  ;;  %600 = vmatpush.msrb.mxu1 %v263_v9 }
  0xba   :  { %617 = vmatpush.msrb.mxu2 %v320_v10  ;;  %637 = vmatpush.msrb.mxu3 %v368_v11 }
  0xbb   :  { %581 = vmatpush.msrb.mxu0 %v212_v12  ;;  %601 = vmatpush.msrb.mxu1 %v260_v13 }
  0xbc   :  { %618 = vmatpush.msrb.mxu2 %v317_v14  ;;  %638 = vmatpush.msrb.mxu3 %v365_v15 }
  0xbd   :  { %582 = vmatpush.msrb.mxu0 %v209_v18  ;;  %602 = vmatpush.msrb.mxu1 %v257_v19 }
  0xbe   :  { %619 = vmatpush.msrb.mxu2 %v314_v20  ;;  %639 = vmatpush.msrb.mxu3 %v362_v21 }
  0xbf   :  { %583 = vmatmul.f32.vlgmr.msrb.gmra.mxu0 %v928_v16  ;;  %603 = vmatmul.f32.vlgmr.msrb.gmra.mxu1 %v930_v17  ;;  %v399_v16 = vld [vmem:[%s964_s4] sm:$0x7] }
  0xc0   :  { %620 = vmatpush.msrb.mxu2 %v311_v22  ;;  %640 = vmatpush.msrb.mxu3 %v359_v23  ;;  %v401_v32 = vperm.slane %v399_v16, 0  ;;  %v402_v33 = vperm.slane %v399_v16, 1  ;;  %v403_v42 = vperm.slane %v399_v16, 2 }
  0xc2   :  { %621 = vmatpush.msrb.mxu2 %v308_v24  ;;  %641 = vmatpush.msrb.mxu3 %v356_v25 }
  0xc4   :  { %622 = vmatpush.msrb.mxu2 %v305_v26  ;;  %642 = vmatpush.msrb.mxu3 %v353_v27 }
  0xc5   :  { %623 = vmatmul.f32.vlgmr.msrb.gmra.mxu2 %v934_v30  ;;  %643 = vmatmul.f32.vlgmr.msrb.gmra.mxu3 %v936_v31 }
 0x118   :  { %v424_v28 = vpop.f32.mrf.mxu0 }
 0x119   :  { %v444_v29 = vpop.f32.mrf.mxu1  ;;  %v425_v36 = vadd.f32 %v424_v28, %v401_v32 }
 0x11b   :  { %v445_v40 = vadd.f32 %v444_v29, %v425_v36 }
 0x122   :  { %v504_v34 = vpop.f32.mrf.mxu0 }
 0x123   :  { %v505_v37 = vadd.f32 %v504_v34, %v402_v33 }
 0x124   :  { %v524_v38 = vpop.f32.mrf.mxu1 }
 0x125   :  { %v464_v17 = vpop.f32.mrf.mxu2  ;;  %v525_v41 = vadd.f32 %v524_v38, %v505_v37 }
 0x126   :  { %v484_v35 = vpop.f32.mrf.mxu3  ;;  %v465_v43 = vadd.f32 %v464_v17, %v445_v40 }
 0x128   :  { %v485_v47 = vadd.f32 %v484_v35, %v465_v43 }
 0x12a   :  { %v647_v54 = vmax.f32 %v485_v47, 0.0 }
 0x12c   :  { %v658_v61 = vmul.f32 %v652_v55, %v647_v54 }
 0x12f   :  { %v544_v39 = vpop.f32.mrf.mxu2  ;;  %v564_v44 = vpop.f32.mrf.mxu3 }
 0x130   :  { %v545_v30 = vadd.f32 %v544_v39, %v525_v41 }
 0x132   :  { %v565_v45 = vadd.f32 %v564_v44, %v545_v30 }
 0x134   :  { %v648_v50 = vmax.f32 %v565_v45, 0.0 }
 0x136   :  { %v659_v58 = vmul.f32 %v653_v51, %v648_v50 }
 0x138   :  { %v661_v0 = vadd.f32 %v659_v58, %v658_v61 }
 0x13c   :  { %v584_v31 = vpop.f32.mrf.mxu0  ;;  %v604_v49 = vpop.f32.mrf.mxu1 }
 0x13d   :  { %v585_v46 = vadd.f32 %v584_v31, %v403_v42 }
 0x13f   :  { %v605_v52 = vadd.f32 %v604_v49, %v585_v46 }
 0x148   :  { %v624_v53 = vpop.f32.mrf.mxu2  ;;  %v644_v57 = vpop.f32.mrf.mxu3 }
 0x149   :  { %v625_v56 = vadd.f32 %v624_v53, %v605_v52 }
 0x14b   :  { %v645_v59 = vadd.f32 %v644_v57, %v625_v56 }
 0x14d   :  { %v649_v62 = vmax.f32 %v645_v59, 0.0 }
 0x14f   :  { %v660_v63 = vmul.f32 %v654_v60, %v649_v62 }
 0x151   :  { %v662_v1 = vadd.f32 %v661_v0, %v660_v63 }
 0x153   :  { %663 = vadd.xlane.f32.xlu0 %v662_v1 }
 0x1c6   :  { %v664_v3 = vpop.xlane.xlu0 %663 }
 0x1c7   :  { %v667_v4 = vadd.f32 %v666_v2, %v664_v3 }
 0x1c9   :  { %668 = vxpose.xlu0.b32.start.end [1/1] (short) (narrow) %v667_v4, 8 }
 0x26d   :  { %v684_v5 = vpop.trf.xlu0 }
 0x26e   :  { %701 = vst.msk [vmem:[#allocation11] sm:$0x1] %vm700_vm2, %v684_v5 }
 0x26f   :  { %712 = dma.vmem_to_hbm [thread:$0]  %s708_s26, 16, %s710_s29, [#allocation5]  }
 0x270   :  { %865 = dma.done.wait [#allocation5], 16  }
 0x271   :  { %866 = vsyncadd [#allocation5], 4294967280 }
 0x272   :  { %717 = vsyncpa [#allocation4], 1 }
 0x273   :  { %718 = vsyncpa [#allocation7], 1 }
 0x274   :  { %719 = vsyncpa [#allocation10], 1 }
 0x275   :  { %720 = vsyncpa [#allocation5], 1 }

</bundles_post_ra>
